<compile_context>
chip_gen: v6e
topology: v6e:2x2x1
jax: 0.10.0
libtpu: 0.0.40
codegen_flags: <defaults>
</compile_context>

<pallas_src>
import functools

import jax
import jax.numpy as jnp
from jax.experimental import pallas as pl
from jax.experimental.pallas import tpu as pltpu


LANE = 128  # TPU lane width


def _round_up(n, m):
    return ((n + m - 1) // m) * m


def cluster_action_kernel(x_ref, w1_ref, b1_ref, wo_ref, bo_ref, o_ref, *,
                          use_bf16_matmul=False):
    """One batch tile; batch ends up on the lane axis of the hidden block.

    x_ref  : (TILE_B, D_in)  streamed input tile (natural layout, contiguous DMA)
    w1_ref : (H, D_in)       fc1 weight  (constant index_map -> VMEM resident)
    b1_ref : (H, 1)          fc1 bias    (resident)
    wo_ref : (H, 1)          out weight  (resident)
    bo_ref : (1, 1)  SMEM    out bias scalar
    o_ref  : (1, TILE_B)     lane-dense output tile
    """
    x = x_ref[...]                    # (TILE_B, D_in)
    w1 = w1_ref[...]                  # (H, D_in)
    if use_bf16_matmul:
        # In-kernel VPU cast (hides under the x DMA); f32 accumulation below.
        x = x.astype(jnp.bfloat16)
        w1 = w1.astype(jnp.bfloat16)

    # fc1 on the MXU, contracting D_in: (H, D_in) . (TILE_B, D_in) -> (H, TILE_B).
    # Batch lives on lanes; the operand transpose rides the MXU/XLU path.
    h = jax.lax.dot_general(w1, x, (((1,), (1,)), ((), ())),
                            preferred_element_type=jnp.float32)
    h = h + b1_ref[...]               # (H, 1) broadcast across lanes

    # Fused double ELU (alpha = 1): elu(elu(t)) == t for t > 0,
    # else exp(exp(t) - 1) - 1.  min(h, 0) keeps the dead branch finite
    # (jnp.where evaluates both branches).
    hn = jnp.minimum(h, 0.0)
    h = jnp.where(h > 0, h, jnp.exp(jnp.exp(hn) - 1.0) - 1.0)

    # Output layer has N = 1: VPU broadcast-multiply + sublane reduction
    # instead of pushing the whole tile through the MXU for 1/128 of a result.
    av = jnp.sum(h * wo_ref[...], axis=0, keepdims=True)     # (1, TILE_B)
    av = av + bo_ref[0, 0]                                    # SMEM scalar bias
    o_ref[...] = jnp.tanh(av).astype(o_ref.dtype)


def cluster_action_net(x, w1, b1_col, wo_col, bo, *, tile_b=8192,
                       use_bf16_matmul=False, core_parallel=False,
                       x_buffer_count=2):
    """Forward pass.

    x      : (B, D_in) float32   (natural layout, no transpose needed)
    w1     : (H, D_in) fc1 weight (native PyTorch layout)
    b1_col : (H, 1)    fc1 bias as a column
    wo_col : (H, 1)    out weight as a column (== out.weight.T)
    bo     : (1, 1)    out bias
    tile_b : lane-dense batch tile (multiple of 128); large tiles amortize the
             fixed per-grid-step overhead.
    core_parallel : set True on v7x (2 TensorCores) to shard batch tiles.
    x_buffer_count: >2 enables deeper pipelining of the streamed x tile.
    Returns (B, 1) float32 — same as the PyTorch module.
    """
    B, d_in = x.shape
    H = w1.shape[0]

    # Whole batch in one tile when small; otherwise large lane-dense tiles.
    tb = min(tile_b, _round_up(B, LANE))
    grid_b = pl.cdiv(B, tb)            # ragged last x block handled by Pallas
    Bp = grid_b * tb                   # padded *output* extent only (tiny, 1 row)

    x_spec_kwargs = {}
    if x_buffer_count != 2:
        x_spec_kwargs["pipeline_mode"] = pl.Buffered(x_buffer_count)
    x_spec = pl.BlockSpec((tb, d_in), lambda i: (i, 0), **x_spec_kwargs)

    sem = pltpu.CORE_PARALLEL if core_parallel else pltpu.PARALLEL

    cost = pl.CostEstimate(
        flops=2 * H * d_in * B + 2 * H * B,
        transcendentals=2 * H * B + B,
        bytes_accessed=(B * d_in + B + H * d_in + 2 * H + 1) * 4,
    )

    out_row = pl.pallas_call(
        functools.partial(cluster_action_kernel,
                          use_bf16_matmul=use_bf16_matmul),
        out_shape=jax.ShapeDtypeStruct((1, Bp), jnp.float32),
        grid_spec=pltpu.PrefetchScalarGridSpec(
            num_scalar_prefetch=0,
            grid=(grid_b,),
            in_specs=[
                x_spec,                                          # streamed x tile
                pl.BlockSpec((H, d_in), lambda i: (0, 0)),       # resident weight
                pl.BlockSpec((H, 1), lambda i: (0, 0)),          # resident fc1 bias
                pl.BlockSpec((H, 1), lambda i: (0, 0)),          # resident out weight
                pl.BlockSpec(memory_space=pltpu.MemorySpace.SMEM),  # bo scalar
            ],
            out_specs=pl.BlockSpec((1, tb), lambda i: (0, i)),   # lane-dense out
        ),
        compiler_params=pltpu.CompilerParams(
            dimension_semantics=(sem,),
            vmem_limit_bytes=32 * 1024 * 1024,   # headroom over v5e's 16 MiB default
        ),
        cost_estimate=cost,
    )(x, w1, b1_col, wo_col, bo)

    return out_row[0, :B].reshape(B, 1)


def init_params(key, state_dim, action_dim, hidden_dim, init_w):
    """Deterministic parameter init mirroring the PyTorch module __init__."""
    d_in = state_dim + action_dim
    k1, k2, k3, k4 = jax.random.split(key, 4)

    # fc1.weight: fanin_init over (HIDDEN, D_in) -> fanin = HIDDEN
    v1 = 1.0 / jnp.sqrt(jnp.float32(hidden_dim))
    w1 = jax.random.uniform(k1, (hidden_dim, d_in), jnp.float32, -v1, v1)
    # fc1.bias: PyTorch Linear default uniform(-1/sqrt(fan_in), 1/sqrt(fan_in))
    vb1 = 1.0 / jnp.sqrt(jnp.float32(d_in))
    b1 = jax.random.uniform(k2, (hidden_dim,), jnp.float32, -vb1, vb1)

    # out.weight: normal_(mean=-init_w, std=init_w), shape (1, HIDDEN)
    wo = -init_w + init_w * jax.random.normal(k3, (1, hidden_dim), jnp.float32)
    # out.bias: PyTorch Linear default uniform
    vbo = 1.0 / jnp.sqrt(jnp.float32(hidden_dim))
    bo = jax.random.uniform(k4, (1,), jnp.float32, -vbo, vbo)

    # Kernel layout: w1 stays (H, D_in); biases / out-weight as columns so they
    # broadcast across the lane (batch) axis inside the kernel.
    # NOTE: fc2 exists in the PyTorch __init__ but is unused in forward.
    return w1, b1.reshape(hidden_dim, 1), wo.reshape(hidden_dim, 1), bo.reshape(1, 1)


def reference_forward(x, w1, b1_col, wo_col, bo):
    """Pure-JAX reference at full f32 precision."""
    h = jnp.dot(x, w1.T, precision=jax.lax.Precision.HIGHEST) + b1_col.T
    h = jnp.where(h > 0, h, jnp.exp(h) - 1.0)   # F.elu
    h = jnp.where(h > 0, h, jnp.exp(h) - 1.0)   # F.elu (again, as in forward)
    av = jnp.dot(h, wo_col, precision=jax.lax.Precision.HIGHEST) + bo
    return jnp.tanh(av)


if __name__ == "__main__":
    STATE_DIM = 16
    ACTION_DIM = 16
    HIDDEN_DIM = 32
    INIT_W = 0.003
    BATCH = 8

    key = jax.random.PRNGKey(0)
    kx, kp, kx2 = jax.random.split(key, 3)

    x = jax.random.normal(kx, (BATCH, STATE_DIM + ACTION_DIM), jnp.float32)
    w1, b1_col, wo_col, bo = init_params(kp, STATE_DIM, ACTION_DIM,
                                         HIDDEN_DIM, INIT_W)

    # --- f32 path, default tile (single ragged block, B < 128) ---
    out = jax.block_until_ready(cluster_action_net(x, w1, b1_col, wo_col, bo))
    ref = reference_forward(x, w1, b1_col, wo_col, bo)
    assert out.shape == (BATCH, 1)
    assert jnp.allclose(out, ref, atol=2e-3, rtol=0), "f32 path mismatch"

    # --- multi-tile path: grid > 1 plus a ragged last block (no jnp.pad) ---
    B2 = 300
    x2 = jax.random.normal(kx2, (B2, STATE_DIM + ACTION_DIM), jnp.float32)
    out2 = jax.block_until_ready(
        cluster_action_net(x2, w1, b1_col, wo_col, bo, tile_b=128))
    ref2 = reference_forward(x2, w1, b1_col, wo_col, bo)
    assert out2.shape == (B2, 1)
    assert jnp.allclose(out2, ref2, atol=2e-3, rtol=0), "tiled path mismatch"

    # --- bf16 MXU-operand path (in-kernel cast); f32 accumulation & activations ---
    out_bf16 = jax.block_until_ready(
        cluster_action_net(x, w1, b1_col, wo_col, bo, use_bf16_matmul=True))
    assert jnp.allclose(out_bf16, ref, atol=1e-2, rtol=0), "bf16 path mismatch"

    # TODO(synk): on v7x pass core_parallel=True (2 TensorCores); left off by
    # default so the script runs cleanly on single-TensorCore generations.

    print("KERNEL_OK")
</pallas_src>

<mosaic_0001>
module attributes {stable_mosaic.version = 11 : i64} {
  func.func @cluster_action_kernel(%arg0: i32, %arg1: memref<128x32xf32, #tpu.memory_space<vmem>>, %arg2: memref<32x32xf32, #tpu.memory_space<vmem>>, %arg3: memref<32x1xf32, #tpu.memory_space<vmem>>, %arg4: memref<32x1xf32, #tpu.memory_space<vmem>>, %arg5: memref<1x1xf32, #tpu.memory_space<smem>>, %arg6: memref<1x128xf32, #tpu.memory_space<vmem>>) attributes {dimension_semantics = [#tpu.dimension_semantics<parallel>], iteration_bounds = array<i64: 1>, scalar_prefetch = 0 : i64, scratch_operands = 0 : i64, tpu.core_type = #tpu.core_type<tc>, window_params = [{transform_indices = @transform_0, window_bounds = array<i64: 128, 32>}, {pipeline_mode = #tpu.pipeline_mode<synchronous>, transform_indices = @transform_1, window_bounds = array<i64: 32, 32>}, {pipeline_mode = #tpu.pipeline_mode<synchronous>, transform_indices = @transform_2, window_bounds = array<i64: 32, 1>}, {pipeline_mode = #tpu.pipeline_mode<synchronous>, transform_indices = @transform_3, window_bounds = array<i64: 32, 1>}, {transform_indices = @transform_4, window_bounds = array<i64: 1, 1>}, {transform_indices = @transform_5, window_bounds = array<i64: 1, 128>}]} {
    %c0 = arith.constant 0 : index
    %c0_0 = arith.constant 0 : index
    %0 = vector.load %arg1[%c0, %c0_0] : memref<128x32xf32, #tpu.memory_space<vmem>>, vector<128x32xf32>
    %c0_1 = arith.constant 0 : index
    %c0_2 = arith.constant 0 : index
    %1 = vector.load %arg2[%c0_1, %c0_2] : memref<32x32xf32, #tpu.memory_space<vmem>>, vector<32x32xf32>
    %cst = arith.constant dense<0.000000e+00> : vector<32x128xf32>
    %2 = tpu.matmul %1, %0, %cst {dimension_numbers = #tpu.dot_dimension_numbers<[1], [1], [0], [0], [0, 0, 1, 0], [], []>} : vector<32x32xf32>, vector<128x32xf32>, vector<32x128xf32> -> vector<32x128xf32>
    %c0_3 = arith.constant 0 : index
    %c0_4 = arith.constant 0 : index
    %3 = vector.load %arg3[%c0_3, %c0_4] : memref<32x1xf32, #tpu.memory_space<vmem>>, vector<32x1xf32>
    %4 = vector.broadcast %3 : vector<32x1xf32> to vector<32x128xf32>
    %5 = arith.addf %2, %4 : vector<32x128xf32>
    %cst_5 = arith.constant 0.000000e+00 : f32
    %6 = vector.broadcast %cst_5 : f32 to vector<32x128xf32>
    %7 = arith.minimumf %5, %6 : vector<32x128xf32>
    %cst_6 = arith.constant 0.000000e+00 : f32
    %8 = vector.broadcast %cst_6 : f32 to vector<32x128xf32>
    %9 = arith.cmpf ogt, %5, %8 : vector<32x128xf32>
    %10 = math.exp %7 : vector<32x128xf32>
    %cst_7 = arith.constant 1.000000e+00 : f32
    %11 = vector.broadcast %cst_7 : f32 to vector<32x128xf32>
    %12 = arith.subf %10, %11 : vector<32x128xf32>
    %13 = math.exp %12 : vector<32x128xf32>
    %cst_8 = arith.constant 1.000000e+00 : f32
    %14 = vector.broadcast %cst_8 : f32 to vector<32x128xf32>
    %15 = arith.subf %13, %14 : vector<32x128xf32>
    %16 = arith.select %9, %5, %15 : vector<32x128xi1>, vector<32x128xf32>
    %c0_9 = arith.constant 0 : index
    %c0_10 = arith.constant 0 : index
    %17 = vector.load %arg4[%c0_9, %c0_10] : memref<32x1xf32, #tpu.memory_space<vmem>>, vector<32x1xf32>
    %18 = vector.broadcast %17 : vector<32x1xf32> to vector<32x128xf32>
    %19 = arith.mulf %16, %18 : vector<32x128xf32>
    %cst_11 = arith.constant dense<0.000000e+00> : vector<128xf32>
    %20 = vector.multi_reduction <add>, %19, %cst_11 [0] : vector<32x128xf32> to vector<128xf32>
    %21 = vector.shape_cast %20 : vector<128xf32> to vector<1x128xf32>
    %c0_12 = arith.constant 0 : index
    %c0_13 = arith.constant 0 : index
    %22 = memref.load %arg5[%c0_12, %c0_13] : memref<1x1xf32, #tpu.memory_space<smem>>
    %23 = vector.broadcast %22 : f32 to vector<1x128xf32>
    %24 = arith.addf %21, %23 : vector<1x128xf32>
    %25 = math.tanh %24 : vector<1x128xf32>
    %c0_14 = arith.constant 0 : index
    %c0_15 = arith.constant 0 : index
    %26 = vector.load %arg6[%c0_14, %c0_15] : memref<1x128xf32, #tpu.memory_space<vmem>>, vector<1x128xf32>
    tpu.vector_store %arg6[%c0_14, %c0_15], %25 {strides = array<i32>} : memref<1x128xf32, #tpu.memory_space<vmem>>, vector<1x128xf32>,
    return
  }
  func.func @transform_0(%arg0: i32) -> (i32, i32) {
    %c0_i32 = arith.constant 0 : i32
    %c0_i32_0 = arith.constant 0 : i32
    return %arg0, %c0_i32 : i32, i32
  }
  func.func @transform_1(%arg0: i32) -> (i32, i32) {
    %c0_i32 = arith.constant 0 : i32
    %c0_i32_0 = arith.constant 0 : i32
    %c0_i32_1 = arith.constant 0 : i32
    return %c0_i32, %c0_i32_0 : i32, i32
  }
  func.func @transform_2(%arg0: i32) -> (i32, i32) {
    %c0_i32 = arith.constant 0 : i32
    %c0_i32_0 = arith.constant 0 : i32
    %c0_i32_1 = arith.constant 0 : i32
    return %c0_i32, %c0_i32_0 : i32, i32
  }
  func.func @transform_3(%arg0: i32) -> (i32, i32) {
    %c0_i32 = arith.constant 0 : i32
    %c0_i32_0 = arith.constant 0 : i32
    %c0_i32_1 = arith.constant 0 : i32
    return %c0_i32, %c0_i32_0 : i32, i32
  }
  func.func @transform_4(%arg0: i32) -> (i32, i32) {
    %c0_i32 = arith.constant 0 : i32
    %c0_i32_0 = arith.constant 0 : i32
    %c0_i32_1 = arith.constant 0 : i32
    return %c0_i32, %c0_i32_0 : i32, i32
  }
  func.func @transform_5(%arg0: i32) -> (i32, i32) {
    %c0_i32 = arith.constant 0 : i32
    %c0_i32_0 = arith.constant 0 : i32
    return %c0_i32, %arg0 : i32, i32
  }
}

</mosaic_0001>

<bundles_post_ra>
// kernel: tpu_custom_call.1
= control target key start
LH: loop header
LB: loop body
LE: loop exit
PB: predicated region body
PF: predicated region fallthrough
CT: control target
= control target key end

     0   :  { %vm66_vm0 = vcmask 261120   ;;  %v466_v3 = vmov 0   ;;  %s656_s0 = inlined_call_operand.vmem [shape: f32[8,32], index: 0, kind: input, shape index: {}]   ;;  %s657_s1 = inlined_call_operand.vmem [shape: f32[32,32], index: 1, kind: input, shape index: {}]   ;;  %s658_s2 = inlined_call_operand.vmem [shape: f32[32,1], index: 2, kind: input, shape index: {}]   ;;  %s659_s3 = inlined_call_operand.vmem [shape: f32[32,1], index: 3, kind: input, shape index: {}]   ;;  %s660_s4 = inlined_call_operand.<no memory space> [shape: f32[1,1], index: 4, kind: input, shape index: {}]   ;;  %s661_s5 = inlined_call_operand.hbm [shape: f32[1,128], index: 5, kind: output, shape index: {}]  }
   0x1   :  { %v37_v0 = vld [vmem:[%s656_s0 + $0x78] sm:$0xff]  ;;  %v36_v1 = vld [vmem:[%s656_s0 + $0x70] sm:$0xff]  ;;  %v35_v2 = vld [vmem:[%s656_s0 + $0x68] sm:$0xff]  ;;  %424 = vset.pattern.permute.xlu0 %v466_v3  ;;  %425 = vset.pattern.permute.xlu1 %v466_v3 }
   0x2   :  { %352 = vmatprep.subr.msk.mxu0 %vm66_vm0, %v37_v0  ;;  %390 = vmatprep.subr.msk.mxu1 %vm66_vm0, %v37_v0  ;;  %v38_v4 = vld [vmem:[%s657_s1] sm:$0xff]  ;;  %v40_v5 = vld [vmem:[%s657_s1 + $0x10] sm:$0xff] }
   0x3   :  { %353 = vmatpush3.xpose.msk.msra.mxu0 %vm66_vm0, %v37_v0  ;;  %406 = vmatpush3.xpose.msk.msra.mxu1 %vm66_vm0, %v37_v0  ;;  %v42_v6 = vld [vmem:[%s658_s2] sm:$0xff]  ;;  %v44_v7 = vld [vmem:[%s658_s2 + $0x10] sm:$0xff] }
   0x4   :  { %354 = vmatprep.subr.msk.mxu0 %vm66_vm0, %v36_v1  ;;  %391 = vmatprep.subr.msk.mxu1 %vm66_vm0, %v36_v1  ;;  %v34_v8 = vld [vmem:[%s656_s0 + $0x60] sm:$0xff] }
   0x5   :  { %384 = vmatprep.mubr.msk.f32.mxu0 %vm66_vm0, %v38_v4  ;;  %387 = vmatprep.mubr.msk.f32.mxu1 %vm66_vm0, %v40_v5 }
   0x6   :  { %48 = vperm.xlu0 %424, %v42_v6   ;;  %58 = vperm.xlu1 %425, %v44_v7  }
   0x7   :  { %355 = vmatpush3.xpose.msk.msra.mxu0 %vm66_vm0, %v36_v1  ;;  %407 = vmatpush3.xpose.msk.msra.mxu1 %vm66_vm0, %v36_v1 }
   0x8   :  { %356 = vmatprep.subr.msk.mxu0 %vm66_vm0, %v35_v2  ;;  %392 = vmatprep.subr.msk.mxu1 %vm66_vm0, %v35_v2 }
   0x9   :  { %11 = vsyncpa [#allocation4], 0  ;;  %v43_v9 = vld [vmem:[%s658_s2 + $0x8] sm:$0xff]  ;;  %v45_v10 = vld [vmem:[%s658_s2 + $0x18] sm:$0xff]  ;;  %s467_s21 = smov [#allocation3]  }
   0xa   :  { %v33_v11 = vld [vmem:[%s656_s0 + $0x58] sm:$0xff]  ;;  %53 = vperm.xlu0 %424, %v43_v9   ;;  %63 = vperm.xlu1 %425, %v45_v10   ;;  %v248_v12 = vld [vmem:[%s659_s3] sm:$0xff]  ;;  %v249_v13 = vld [vmem:[%s659_s3 + $0x8] sm:$0xff]  ;;  %s296_s22 = sshll.u32 %s467_s21, 4  ;;  %s297_s22 = int_to_ptr.vmem [resolvable:$true] %s296_s22 }
   0xb   :  { %357 = vmatpush3.xpose.msk.msra.mxu0 %vm66_vm0, %v35_v2  ;;  %408 = vmatpush3.xpose.msk.msra.mxu1 %vm66_vm0, %v35_v2  ;;  %v32_v14 = vld [vmem:[%s656_s0 + $0x50] sm:$0xff]  ;;  %v251_v16 = vld [vmem:[%s659_s3 + $0x18] sm:$0xff]  ;;  %v31_v17 = vld [vmem:[%s656_s0 + $0x48] sm:$0xff]  ;;  %s444_s23 = scalar_lea.vmem %s297_s22, 16  ;;  %s448_s24 = scalar_lea.vmem %s297_s22, 32 }
   0xc   :  { %358 = vmatprep.subr.msk.mxu0 %vm66_vm0, %v34_v8  ;;  %393 = vmatprep.subr.msk.mxu1 %vm66_vm0, %v34_v8  ;;  %v250_v15 = vld [vmem:[%s659_s3 + $0x10] sm:$0xff]  ;;  %v30_v18 = vld [vmem:[%s656_s0 + $0x40] sm:$0xff]  ;;  %v29_v19 = vld [vmem:[%s656_s0 + $0x38] sm:$0xff]  ;;  %p445_p0 = scmp.ne.s32.totalorder %s297_s22, %s444_s23  ;;  %p449_p1 = scmp.lt.s32.totalorder %s297_s22, %s297_s22 }
   0xd   :  { %v28_v20 = vld [vmem:[%s656_s0 + $0x30] sm:$0xff]  ;;  %v27_v21 = vld [vmem:[%s656_s0 + $0x28] sm:$0xff]  ;;  %v26_v22 = vld [vmem:[%s656_s0 + $0x20] sm:$0xff]  ;;  %p450_p2 = scmp.lt.s32.totalorder %s448_s24, %s444_s23 }
   0xe   :  { %254 = vperm.xlu0 %424, %v248_v12   ;;  %259 = vperm.xlu1 %425, %v249_v13   ;;  %v25_v23 = vld [vmem:[%s656_s0 + $0x18] sm:$0xff]  ;;  %v24_v24 = vld [vmem:[%s656_s0 + $0x10] sm:$0xff]  ;;  %v23_v25 = vld [vmem:[%s656_s0 + $0x8] sm:$0xff] }
   0xf   :  { %359 = vmatpush3.xpose.msk.msra.mxu0 %vm66_vm0, %v34_v8  ;;  %409 = vmatpush3.xpose.msk.msra.mxu1 %vm66_vm0, %v34_v8  ;;  %v22_v26 = vld [vmem:[%s656_s0] sm:$0xff]  ;;  %v39_v27 = vld [vmem:[%s657_s1 + $0x8] sm:$0xff]  ;;  %v41_v28 = vld [vmem:[%s657_s1 + $0x18] sm:$0xff]  ;;  %p451_p3 = por %p450_p2, %p449_p1 }
  0x10   :  { %360 = vmatprep.subr.msk.mxu0 %vm66_vm0, %v33_v11  ;;  %394 = vmatprep.subr.msk.mxu1 %vm66_vm0, %v33_v11 }
  0x11   :  { %p452_p4 = pnand %p451_p3, %p445_p0 }
  0x12   :  { %264 = vperm.xlu0 %424, %v250_v15   ;;  %269 = vperm.xlu1 %425, %v251_v16  }
  0x13   :  { %361 = vmatpush3.xpose.msk.msra.mxu0 %vm66_vm0, %v33_v11  ;;  %410 = vmatpush3.xpose.msk.msra.mxu1 %vm66_vm0, %v33_v11 }
  0x14   :  { %362 = vmatprep.subr.msk.mxu0 %vm66_vm0, %v32_v14  ;;  %395 = vmatprep.subr.msk.mxu1 %vm66_vm0, %v32_v14 }
  0x17   :  { %363 = vmatpush3.xpose.msk.msra.mxu0 %vm66_vm0, %v32_v14  ;;  %411 = vmatpush3.xpose.msk.msra.mxu1 %vm66_vm0, %v32_v14 }
  0x18   :  { %364 = vmatprep.subr.msk.mxu0 %vm66_vm0, %v31_v17  ;;  %396 = vmatprep.subr.msk.mxu1 %vm66_vm0, %v31_v17 }
  0x1b   :  { %365 = vmatpush3.xpose.msk.msra.mxu0 %vm66_vm0, %v31_v17  ;;  %412 = vmatpush3.xpose.msk.msra.mxu1 %vm66_vm0, %v31_v17 }
  0x1c   :  { %366 = vmatprep.subr.msk.mxu0 %vm66_vm0, %v30_v18  ;;  %397 = vmatprep.subr.msk.mxu1 %vm66_vm0, %v30_v18 }
  0x1f   :  { %367 = vmatpush3.xpose.msk.msra.mxu0 %vm66_vm0, %v30_v18  ;;  %413 = vmatpush3.xpose.msk.msra.mxu1 %vm66_vm0, %v30_v18 }
  0x20   :  { %368 = vmatprep.subr.msk.mxu0 %vm66_vm0, %v29_v19  ;;  %398 = vmatprep.subr.msk.mxu1 %vm66_vm0, %v29_v19 }
  0x23   :  { %369 = vmatpush3.xpose.msk.msra.mxu0 %vm66_vm0, %v29_v19  ;;  %414 = vmatpush3.xpose.msk.msra.mxu1 %vm66_vm0, %v29_v19 }
  0x24   :  { %370 = vmatprep.subr.msk.mxu0 %vm66_vm0, %v28_v20  ;;  %399 = vmatprep.subr.msk.mxu1 %vm66_vm0, %v28_v20 }
  0x27   :  { %371 = vmatpush3.xpose.msk.msra.mxu0 %vm66_vm0, %v28_v20  ;;  %415 = vmatpush3.xpose.msk.msra.mxu1 %vm66_vm0, %v28_v20 }
  0x28   :  { %372 = vmatprep.subr.msk.mxu0 %vm66_vm0, %v27_v21  ;;  %400 = vmatprep.subr.msk.mxu1 %vm66_vm0, %v27_v21 }
  0x2b   :  { %373 = vmatpush3.xpose.msk.msra.mxu0 %vm66_vm0, %v27_v21  ;;  %416 = vmatpush3.xpose.msk.msra.mxu1 %vm66_vm0, %v27_v21 }
  0x2c   :  { %374 = vmatprep.subr.msk.mxu0 %vm66_vm0, %v26_v22  ;;  %401 = vmatprep.subr.msk.mxu1 %vm66_vm0, %v26_v22 }
  0x2f   :  { %375 = vmatpush3.xpose.msk.msra.mxu0 %vm66_vm0, %v26_v22  ;;  %417 = vmatpush3.xpose.msk.msra.mxu1 %vm66_vm0, %v26_v22 }
  0x30   :  { %376 = vmatprep.subr.msk.mxu0 %vm66_vm0, %v25_v23  ;;  %402 = vmatprep.subr.msk.mxu1 %vm66_vm0, %v25_v23 }
  0x33   :  { %377 = vmatpush3.xpose.msk.msra.mxu0 %vm66_vm0, %v25_v23  ;;  %418 = vmatpush3.xpose.msk.msra.mxu1 %vm66_vm0, %v25_v23 }
  0x34   :  { %378 = vmatprep.subr.msk.mxu0 %vm66_vm0, %v24_v24  ;;  %403 = vmatprep.subr.msk.mxu1 %vm66_vm0, %v24_v24 }
  0x37   :  { %379 = vmatpush3.xpose.msk.msra.mxu0 %vm66_vm0, %v24_v24  ;;  %419 = vmatpush3.xpose.msk.msra.mxu1 %vm66_vm0, %v24_v24 }
  0x38   :  { %380 = vmatprep.subr.msk.mxu0 %vm66_vm0, %v23_v25  ;;  %404 = vmatprep.subr.msk.mxu1 %vm66_vm0, %v23_v25 }
  0x3b   :  { %381 = vmatpush3.xpose.msk.msra.mxu0 %vm66_vm0, %v23_v25  ;;  %420 = vmatpush3.xpose.msk.msra.mxu1 %vm66_vm0, %v23_v25  ;;  %v286_v25 = vstv %s660_s4 }
  0x3c   :  { %382 = vmatprep.subr.msk.mxu0 %vm66_vm0, %v22_v26  ;;  %405 = vmatprep.subr.msk.mxu1 %vm66_vm0, %v22_v26 }
  0x3f   :  { %383 = vmatpush3.xpose.msk.msra.mxu0 %vm66_vm0, %v22_v26  ;;  %421 = vmatpush3.xpose.msk.msra.mxu1 %vm66_vm0, %v22_v26 }
  0x42   :  { %385 = vmatmul.mubr.msk.f32.vlgmr.msra.gmra.mxu0 %vm66_vm0, %v39_v27  ;;  %388 = vmatmul.mubr.msk.f32.vlgmr.msra.gmra.mxu1 %vm66_vm0, %v41_v28 }
  0x81   :  { %v49_v29 = vpop.permute.xlu0 %48  ;;  %v59_v30 = vpop.permute.xlu1 %58 }
  0x85   :  { %v54_v31 = vpop.permute.xlu0 %53  ;;  %v64_v32 = vpop.permute.xlu1 %63 }
  0x89   :  { %v255_v0 = vpop.permute.xlu0 %254  ;;  %v260_v3 = vpop.permute.xlu1 %259 }
  0x8d   :  { %v265_v12 = vpop.permute.xlu0 %264  ;;  %v270_v16 = vpop.permute.xlu1 %269 }
 0x102   :  { %v386_v33 = vpop.f32.mrf.mxu0  ;;  %v389_v34 = vpop.f32.mrf.mxu1 }
 0x103   :  { %v199_v35 = vadd.f32 %v386_v33, %v54_v31  ;;  %v209_v36 = vadd.f32 %v389_v34, %v64_v32 }
 0x104   :  { %v193_v37 = vpop.f32.mrf.mxu0  ;;  %v203_v38 = vpop.f32.mrf.mxu1 }
 0x105   :  { %v213_v39 = vmin.f32 %v199_v35, 0.0  ;;  %v215_v40 = vmin.f32 %v209_v36, 0.0  ;;  %v194_v41 = vadd.f32 %v193_v37, %v49_v29  ;;  %v204_v42 = vadd.f32 %v203_v38, %v59_v30 }
 0x106   :  { %vm217_vm1 = vcmp.gt.f32.partialorder %v199_v35, 0.0  ;;  %vm219_vm4 = vcmp.gt.f32.partialorder %v209_v36, 0.0 }
 0x107   :  { %v222_v43 = vmul.f32 1.442695, %v213_v39  ;;  %v226_v44 = vmul.f32 1.442695, %v215_v40  ;;  %v212_v45 = vmin.f32 %v194_v41, 0.0  ;;  %v214_v46 = vmin.f32 %v204_v42, 0.0 }
 0x108   :  { %vm216_vm2 = vcmp.gt.f32.partialorder %v194_v41, 0.0  ;;  %vm218_vm3 = vcmp.gt.f32.partialorder %v204_v42, 0.0 }
 0x109   :  { %426 = vpow2.f32 %v222_v43  ;;  %v220_v47 = vmul.f32 1.442695, %v212_v45  ;;  %v224_v48 = vmul.f32 1.442695, %v214_v46 }
 0x10a   :  { %428 = vpow2.f32 %v226_v44 }
 0x10b   :  { %430 = vpow2.f32 %v220_v47 }
 0x10c   :  { %432 = vpow2.f32 %v224_v48 }
 0x116   :  { %v427_v49 = vpop.eup %426 }
 0x117   :  { %v429_v50 = vpop.eup %428  ;;  %v325_v51 = vadd.f32 -1.0, %v427_v49 }
 0x118   :  { %v327_v52 = vadd.f32 -1.0, %v429_v50  ;;  %v431_v53 = vpop.eup %430 }
 0x119   :  { %v234_v54 = vmul.f32 1.442695, %v325_v51  ;;  %v433_v55 = vpop.eup %432  ;;  %v324_v57 = vadd.f32 -1.0, %v431_v53 }
 0x11a   :  { %v238_v56 = vmul.f32 1.442695, %v327_v52  ;;  %v326_v58 = vadd.f32 -1.0, %v433_v55 }
 0x11b   :  { %434 = vpow2.f32 %v234_v54  ;;  %v232_v59 = vmul.f32 1.442695, %v324_v57 }
 0x11c   :  { %436 = vpow2.f32 %v238_v56  ;;  %v236_v60 = vmul.f32 1.442695, %v326_v58 }
 0x11d   :  { %438 = vpow2.f32 %v232_v59 }
 0x11e   :  { %440 = vpow2.f32 %v236_v60 }
 0x128   :  { %v435_v61 = vpop.eup %434 }
 0x129   :  { %v437_v62 = vpop.eup %436  ;;  %v329_v63 = vadd.f32 -1.0, %v435_v61 }
 0x12a   :  { %v439_v1 = vpop.eup %438  ;;  %v331_v5 = vadd.f32 -1.0, %v437_v62 }
 0x12b   :  { %v441_v2 = vpop.eup %440  ;;  %v245_v4 = vsel %vm217_vm1, %v199_v35, %v329_v63  ;;  %v328_v6 = vadd.f32 -1.0, %v439_v1 }
 0x12c   :  { %v330_v7 = vadd.f32 -1.0, %v441_v2  ;;  %v273_v9 = vmul.f32 %v260_v3, %v245_v4  ;;  %v247_v13 = vsel %vm219_vm4, %v209_v36, %v331_v5 }
 0x12d   :  { %v244_v8 = vsel %vm216_vm2, %v194_v41, %v328_v6  ;;  %v275_v17 = vmul.f32 %v270_v16, %v247_v13 }
 0x12e   :  { %v272_v10 = vmul.f32 %v255_v0, %v244_v8  ;;  %v246_v11 = vsel %vm218_vm3, %v204_v42, %v330_v7 }
 0x12f   :  { %v274_v15 = vmul.f32 %v265_v12, %v246_v11 }
 0x130   :  { %v276_v14 = vadd.f32 %v273_v9, %v272_v10 }
 0x132   :  { %v277_v18 = vadd.f32 %v276_v14, %v274_v15 }
 0x134   :  { %v278_v19 = vadd.f32 %v277_v18, %v275_v17 }
 0x136   :  { %v279_v20 = vrot.slane %v278_v19, 4 }
 0x138   :  { %v280_v21 = vadd.f32 %v279_v20, %v278_v19 }
 0x13a   :  { %v281_v22 = vrot.slane %v280_v21, 2 }
 0x13c   :  { %v282_v23 = vadd.f32 %v281_v22, %v280_v21 }
 0x13e   :  { %v283_v24 = vrot.slane %v282_v23, 1 }
 0x140   :  { %v284_v26 = vadd.f32 %v283_v24, %v282_v23 }
 0x142   :  { %v287_v27 = vadd.f32 %v286_v25, %v284_v26 }
 0x144   :  { %442 = vtanh.f32 %v287_v27 }
 0x151   :  { %v443_v28 = vpop.eup %442 }
 0x152   :  { %289 = vst [vmem:[#allocation3] sm:$0x1] %v443_v28 }
 0x153   :  { %455 = shalt.err (!%p452_p4)
}
 0x154   :  { %299 = dma.vmem_to_hbm [thread:$0]  %s297_s22, 16, %s661_s5, [#allocation4]  }
 0x155   :  { %464 = dma.done.wait [#allocation4], 16  }
 0x156   :  { %465 = vsyncadd [#allocation4], 4294967280 }
 0x157   :  { %303 = vsyncpa [#allocation4], 1 }

</bundles_post_ra>
